<compile_context>
chip_gen: v5e
topology: v5e:2x2
jax: 0.10.0
libtpu: 0.0.40
codegen_flags: <defaults>
</compile_context>

<pallas_src>
import jax
import jax.numpy as jnp
from jax import lax
from jax.experimental import pallas as pl
from jax.experimental.pallas import tpu as pltpu

N_TIME = 128   # n_time_embedding
N_NEUR = 64    # n_neurons
MULT = 1       # mult
LN_EPS = 1e-5  # torch.nn.LayerNorm default eps


def _round_up(x, m):
    return (x + m - 1) // m * m


def dense_residual_kernel(x_ref, t_ref,
                          w_sc_ref, b_sc_ref, w_sh_ref, b_sh_ref,
                          w1_ref, b1_ref, w2_ref, b2_ref, o_ref):
    x = x_ref[...].astype(jnp.float32)            # [TB, N]  f32

    # LayerNorm(n_neurons, elementwise_affine=False) — statistics in f32.
    mean = jnp.mean(x, axis=-1, keepdims=True)
    centered = x - mean
    var = jnp.mean(centered * centered, axis=-1, keepdims=True)
    normed = centered * lax.rsqrt(var + LN_EPS)

    # FiLM: two bf16 MXU dots (weight pre-split avoids lane-64 vreg slicing).
    t_bf = t_ref[...].astype(jnp.bfloat16)        # [TB, T]
    scale = jnp.dot(t_bf, w_sc_ref[...],
                    preferred_element_type=jnp.float32) + b_sc_ref[...]
    shift = jnp.dot(t_bf, w_sh_ref[...],
                    preferred_element_type=jnp.float32) + b_sh_ref[...]
    cond = normed * scale + shift                 # [TB, N]  f32

    # branch: Linear -> ReLU -> Linear (gamma already folded into w2/b2).
    h = jnp.dot(cond.astype(jnp.bfloat16), w1_ref[...],
                preferred_element_type=jnp.float32) + b1_ref[...]
    h = jnp.maximum(h, 0.0)
    branch = jnp.dot(h.astype(jnp.bfloat16), w2_ref[...],
                     preferred_element_type=jnp.float32) + b2_ref[...]

    # out = in + branch * gamma   (gamma folded; residual add in f32)
    o_ref[...] = (x + branch).astype(o_ref.dtype)


def dense_residual_forward(x, t, kparams, *, block_b=2048):
    """x: [B, N_NEUR] f32, t: [B, N_TIME] f32, kparams: prepare_kernel_params().

    block_b: batch tile (rows). 2048 is safe for v5e/v6e/v7x default scoped
    VMEM at these feature sizes; raise on v6e (and vmem_limit_bytes) if the
    production batch is large.
    """
    B, N = x.shape
    Bt, T = t.shape
    assert Bt == B and N == N_NEUR and T == N_TIME

    # Pad batch to a sublane-aligned tile so every grid step is full.
    tb = min(block_b, _round_up(B, 8))
    Bp = _round_up(B, tb)
    if Bp != B:
        x_in = jnp.pad(x, ((0, Bp - B), (0, 0)))
        t_in = jnp.pad(t, ((0, Bp - B), (0, 0)))
    else:
        x_in, t_in = x, t
    grid = (Bp // tb,)

    w_args = (kparams["w_scale"], kparams["b_scale"],
              kparams["w_shift"], kparams["b_shift"],
              kparams["w1"], kparams["b1"],
              kparams["w2g"], kparams["b2g"])

    def const_spec(arr):  # whole array, DMA'd once, VMEM-resident across grid
        return pl.BlockSpec(arr.shape, lambda i: (0, 0))

    flops_per_row = 2 * T * (2 * N) + 2 * N * (N * MULT) + 2 * (N * MULT) * N
    bytes_accessed = (x_in.size + t_in.size + x_in.size) * 4 + sum(
        int(w.size) * w.dtype.itemsize for w in w_args)

    out = pl.pallas_call(
        dense_residual_kernel,
        out_shape=jax.ShapeDtypeStruct((Bp, N), x.dtype),
        grid=grid,
        in_specs=[pl.BlockSpec((tb, N), lambda i: (i, 0)),
                  pl.BlockSpec((tb, T), lambda i: (i, 0))]
                 + [const_spec(w) for w in w_args],
        out_specs=pl.BlockSpec((tb, N), lambda i: (i, 0)),
        compiler_params=pltpu.CompilerParams(
            dimension_semantics=("parallel",)),   # megacore split on v7x
        cost_estimate=pl.CostEstimate(
            flops=Bp * flops_per_row, transcendentals=0,
            bytes_accessed=bytes_accessed),
    )(x_in, t_in, *w_args)

    return out[:B] if Bp != B else out


def make_params(key):
    """f32 parameters matching the PyTorch module (weights stored [in, out])."""
    ks = jax.random.split(key, 6)
    w_film = jax.random.normal(ks[0], (N_TIME, 2 * N_NEUR), jnp.float32) * 0.05
    b_film = jax.random.normal(ks[1], (1, 2 * N_NEUR), jnp.float32) * 0.05
    w1 = jax.random.normal(ks[2], (N_NEUR, N_NEUR * MULT), jnp.float32) * 0.05
    b1 = jax.random.normal(ks[3], (1, N_NEUR * MULT), jnp.float32) * 0.05
    w2 = jax.random.normal(ks[4], (N_NEUR * MULT, N_NEUR), jnp.float32) * 0.05
    b2 = jax.random.normal(ks[5], (1, N_NEUR), jnp.float32) * 0.05
    gamma = jnp.full((1, N_NEUR), 1e-6, jnp.float32)
    return dict(w_film=w_film, b_film=b_film, w1=w1, b1=b1, w2=w2, b2=b2,
                gamma=gamma)


def prepare_kernel_params(p):
    """One-time weight transform: split FiLM weight, fold gamma, cast to bf16.

    Biases stay f32 (they are added to f32 MXU accumulators)."""
    return dict(
        w_scale=p["w_film"][:, :N_NEUR].astype(jnp.bfloat16),
        w_shift=p["w_film"][:, N_NEUR:].astype(jnp.bfloat16),
        b_scale=p["b_film"][:, :N_NEUR],
        b_shift=p["b_film"][:, N_NEUR:],
        w1=p["w1"].astype(jnp.bfloat16),
        b1=p["b1"],
        w2g=(p["w2"] * p["gamma"]).astype(jnp.bfloat16),
        b2g=p["b2"] * p["gamma"],
    )


def reference_forward(x, t, p):
    mean = jnp.mean(x, axis=-1, keepdims=True)
    var = jnp.mean((x - mean) ** 2, axis=-1, keepdims=True)
    normed = (x - mean) / jnp.sqrt(var + LN_EPS)
    film = t @ p["w_film"] + p["b_film"]
    cond = normed * film[:, :N_NEUR] + film[:, N_NEUR:]
    h = jnp.maximum(cond @ p["w1"] + p["b1"], 0.0)
    branch = h @ p["w2"] + p["b2"]
    return x + branch * p["gamma"]


if __name__ == "__main__":
    key = jax.random.PRNGKey(0)
    k_x, k_t, k_p = jax.random.split(key, 3)
    params = make_params(k_p)
    kparams = prepare_kernel_params(params)

    # Small case: single grid step.
    B = 8
    x = jax.random.normal(k_x, (B, N_NEUR), jnp.float32)       # in_tensor
    t = jax.random.normal(k_t, (B, N_TIME), jnp.float32)       # time_tensor
    out = jax.block_until_ready(dense_residual_forward(x, t, kparams))
    ref = reference_forward(x, t, params)
    assert out.shape == x.shape and out.dtype == x.dtype
    assert jnp.allclose(out, ref, atol=1e-4, rtol=1e-4), \
        float(jnp.max(jnp.abs(out - ref)))

    # Ragged-batch case: exercises the grid + padding path (B=50, TB=16 -> 4 steps).
    B2 = 50
    x2 = jax.random.normal(jax.random.fold_in(k_x, 1), (B2, N_NEUR), jnp.float32)
    t2 = jax.random.normal(jax.random.fold_in(k_t, 1), (B2, N_TIME), jnp.float32)
    out2 = jax.block_until_ready(
        dense_residual_forward(x2, t2, kparams, block_b=16))
    ref2 = reference_forward(x2, t2, params)
    assert out2.shape == x2.shape
    assert jnp.allclose(out2, ref2, atol=1e-4, rtol=1e-4), \
        float(jnp.max(jnp.abs(out2 - ref2)))

    print("KERNEL_OK")
</pallas_src>

<mosaic_0001>
module attributes {stable_mosaic.version = 11 : i64} {
  func.func @dense_residual_kernel(%arg0: i32, %arg1: memref<8x64xf32, #tpu.memory_space<vmem>>, %arg2: memref<8x128xf32, #tpu.memory_space<vmem>>, %arg3: memref<128x64xbf16, #tpu.memory_space<vmem>>, %arg4: memref<1x64xf32, #tpu.memory_space<vmem>>, %arg5: memref<128x64xbf16, #tpu.memory_space<vmem>>, %arg6: memref<1x64xf32, #tpu.memory_space<vmem>>, %arg7: memref<64x64xbf16, #tpu.memory_space<vmem>>, %arg8: memref<1x64xf32, #tpu.memory_space<vmem>>, %arg9: memref<64x64xbf16, #tpu.memory_space<vmem>>, %arg10: memref<1x64xf32, #tpu.memory_space<vmem>>, %arg11: memref<8x64xf32, #tpu.memory_space<vmem>>) attributes {dimension_semantics = [#tpu.dimension_semantics<parallel>], iteration_bounds = array<i64: 1>, scalar_prefetch = 0 : i64, scratch_operands = 0 : i64, tpu.core_type = #tpu.core_type<tc>, window_params = [{transform_indices = @transform_0, window_bounds = array<i64: 8, 64>}, {transform_indices = @transform_1, window_bounds = array<i64: 8, 128>}, {pipeline_mode = #tpu.pipeline_mode<synchronous>, transform_indices = @transform_2, window_bounds = array<i64: 128, 64>}, {pipeline_mode = #tpu.pipeline_mode<synchronous>, transform_indices = @transform_3, window_bounds = array<i64: 1, 64>}, {pipeline_mode = #tpu.pipeline_mode<synchronous>, transform_indices = @transform_4, window_bounds = array<i64: 128, 64>}, {pipeline_mode = #tpu.pipeline_mode<synchronous>, transform_indices = @transform_5, window_bounds = array<i64: 1, 64>}, {pipeline_mode = #tpu.pipeline_mode<synchronous>, transform_indices = @transform_6, window_bounds = array<i64: 64, 64>}, {pipeline_mode = #tpu.pipeline_mode<synchronous>, transform_indices = @transform_7, window_bounds = array<i64: 1, 64>}, {pipeline_mode = #tpu.pipeline_mode<synchronous>, transform_indices = @transform_8, window_bounds = array<i64: 64, 64>}, {pipeline_mode = #tpu.pipeline_mode<synchronous>, transform_indices = @transform_9, window_bounds = array<i64: 1, 64>}, {transform_indices = @transform_10, window_bounds = array<i64: 8, 64>}]} {
    %c0 = arith.constant 0 : index
    %c0_0 = arith.constant 0 : index
    %0 = vector.load %arg1[%c0, %c0_0] : memref<8x64xf32, #tpu.memory_space<vmem>>, vector<8x64xf32>
    %cst = arith.constant dense<0.000000e+00> : vector<8xf32>
    %1 = vector.multi_reduction <add>, %0, %cst [1] : vector<8x64xf32> to vector<8xf32>
    %2 = vector.shape_cast %1 : vector<8xf32> to vector<8x1xf32>
    %cst_1 = arith.constant 6.400000e+01 : f32
    %3 = vector.broadcast %cst_1 : f32 to vector<8x1xf32>
    %4 = arith.divf %2, %3 : vector<8x1xf32>
    %5 = vector.broadcast %4 : vector<8x1xf32> to vector<8x64xf32>
    %6 = arith.subf %0, %5 : vector<8x64xf32>
    %7 = arith.mulf %6, %6 : vector<8x64xf32>
    %cst_2 = arith.constant dense<0.000000e+00> : vector<8xf32>
    %8 = vector.multi_reduction <add>, %7, %cst_2 [1] : vector<8x64xf32> to vector<8xf32>
    %9 = vector.shape_cast %8 : vector<8xf32> to vector<8x1xf32>
    %cst_3 = arith.constant 6.400000e+01 : f32
    %10 = vector.broadcast %cst_3 : f32 to vector<8x1xf32>
    %11 = arith.divf %9, %10 : vector<8x1xf32>
    %cst_4 = arith.constant 9.99999974E-6 : f32
    %12 = vector.broadcast %cst_4 : f32 to vector<8x1xf32>
    %13 = arith.addf %11, %12 : vector<8x1xf32>
    %14 = math.rsqrt %13 : vector<8x1xf32>
    %15 = vector.broadcast %14 : vector<8x1xf32> to vector<8x64xf32>
    %16 = arith.mulf %6, %15 : vector<8x64xf32>
    %c0_5 = arith.constant 0 : index
    %c0_6 = arith.constant 0 : index
    %17 = vector.load %arg2[%c0_5, %c0_6] : memref<8x128xf32, #tpu.memory_space<vmem>>, vector<8x128xf32>
    %18 = arith.truncf %17 : vector<8x128xf32> to vector<8x128xbf16>
    %c0_7 = arith.constant 0 : index
    %c0_8 = arith.constant 0 : index
    %19 = vector.load %arg3[%c0_7, %c0_8] : memref<128x64xbf16, #tpu.memory_space<vmem>>, vector<128x64xbf16>
    %cst_9 = arith.constant dense<0.000000e+00> : vector<8x64xf32>
    %20 = tpu.matmul %18, %19, %cst_9 {dimension_numbers = #tpu.dot_dimension_numbers<[1], [0], [0], [1], [0, 0, 1, 1], [], []>} : vector<8x128xbf16>, vector<128x64xbf16>, vector<8x64xf32> -> vector<8x64xf32>
    %c0_10 = arith.constant 0 : index
    %c0_11 = arith.constant 0 : index
    %21 = vector.load %arg4[%c0_10, %c0_11] : memref<1x64xf32, #tpu.memory_space<vmem>>, vector<1x64xf32>
    %22 = vector.broadcast %21 : vector<1x64xf32> to vector<8x64xf32>
    %23 = arith.addf %20, %22 : vector<8x64xf32>
    %c0_12 = arith.constant 0 : index
    %c0_13 = arith.constant 0 : index
    %24 = vector.load %arg5[%c0_12, %c0_13] : memref<128x64xbf16, #tpu.memory_space<vmem>>, vector<128x64xbf16>
    %cst_14 = arith.constant dense<0.000000e+00> : vector<8x64xf32>
    %25 = tpu.matmul %18, %24, %cst_14 {dimension_numbers = #tpu.dot_dimension_numbers<[1], [0], [0], [1], [0, 0, 1, 1], [], []>} : vector<8x128xbf16>, vector<128x64xbf16>, vector<8x64xf32> -> vector<8x64xf32>
    %c0_15 = arith.constant 0 : index
    %c0_16 = arith.constant 0 : index
    %26 = vector.load %arg6[%c0_15, %c0_16] : memref<1x64xf32, #tpu.memory_space<vmem>>, vector<1x64xf32>
    %27 = vector.broadcast %26 : vector<1x64xf32> to vector<8x64xf32>
    %28 = arith.addf %25, %27 : vector<8x64xf32>
    %29 = arith.mulf %16, %23 : vector<8x64xf32>
    %30 = arith.addf %29, %28 : vector<8x64xf32>
    %31 = arith.truncf %30 : vector<8x64xf32> to vector<8x64xbf16>
    %c0_17 = arith.constant 0 : index
    %c0_18 = arith.constant 0 : index
    %32 = vector.load %arg7[%c0_17, %c0_18] : memref<64x64xbf16, #tpu.memory_space<vmem>>, vector<64x64xbf16>
    %cst_19 = arith.constant dense<0.000000e+00> : vector<8x64xf32>
    %33 = tpu.matmul %31, %32, %cst_19 {dimension_numbers = #tpu.dot_dimension_numbers<[1], [0], [0], [1], [0, 0, 1, 1], [], []>} : vector<8x64xbf16>, vector<64x64xbf16>, vector<8x64xf32> -> vector<8x64xf32>
    %c0_20 = arith.constant 0 : index
    %c0_21 = arith.constant 0 : index
    %34 = vector.load %arg8[%c0_20, %c0_21] : memref<1x64xf32, #tpu.memory_space<vmem>>, vector<1x64xf32>
    %35 = vector.broadcast %34 : vector<1x64xf32> to vector<8x64xf32>
    %36 = arith.addf %33, %35 : vector<8x64xf32>
    %cst_22 = arith.constant 0.000000e+00 : f32
    %37 = vector.broadcast %cst_22 : f32 to vector<8x64xf32>
    %38 = arith.maximumf %36, %37 : vector<8x64xf32>
    %39 = arith.truncf %38 : vector<8x64xf32> to vector<8x64xbf16>
    %c0_23 = arith.constant 0 : index
    %c0_24 = arith.constant 0 : index
    %40 = vector.load %arg9[%c0_23, %c0_24] : memref<64x64xbf16, #tpu.memory_space<vmem>>, vector<64x64xbf16>
    %cst_25 = arith.constant dense<0.000000e+00> : vector<8x64xf32>
    %41 = tpu.matmul %39, %40, %cst_25 {dimension_numbers = #tpu.dot_dimension_numbers<[1], [0], [0], [1], [0, 0, 1, 1], [], []>} : vector<8x64xbf16>, vector<64x64xbf16>, vector<8x64xf32> -> vector<8x64xf32>
    %c0_26 = arith.constant 0 : index
    %c0_27 = arith.constant 0 : index
    %42 = vector.load %arg10[%c0_26, %c0_27] : memref<1x64xf32, #tpu.memory_space<vmem>>, vector<1x64xf32>
    %43 = vector.broadcast %42 : vector<1x64xf32> to vector<8x64xf32>
    %44 = arith.addf %41, %43 : vector<8x64xf32>
    %45 = arith.addf %0, %44 : vector<8x64xf32>
    %c0_28 = arith.constant 0 : index
    %c0_29 = arith.constant 0 : index
    %46 = vector.load %arg11[%c0_28, %c0_29] : memref<8x64xf32, #tpu.memory_space<vmem>>, vector<8x64xf32>
    tpu.vector_store %arg11[%c0_28, %c0_29], %45 {strides = array<i32>} : memref<8x64xf32, #tpu.memory_space<vmem>>, vector<8x64xf32>,
    return
  }
  func.func @transform_0(%arg0: i32) -> (i32, i32) {
    %c0_i32 = arith.constant 0 : i32
    %c0_i32_0 = arith.constant 0 : i32
    return %arg0, %c0_i32 : i32, i32
  }
  func.func @transform_1(%arg0: i32) -> (i32, i32) {
    %c0_i32 = arith.constant 0 : i32
    %c0_i32_0 = arith.constant 0 : i32
    return %arg0, %c0_i32 : i32, i32
  }
  func.func @transform_2(%arg0: i32) -> (i32, i32) {
    %c0_i32 = arith.constant 0 : i32
    %c0_i32_0 = arith.constant 0 : i32
    %c0_i32_1 = arith.constant 0 : i32
    return %c0_i32, %c0_i32_0 : i32, i32
  }
  func.func @transform_3(%arg0: i32) -> (i32, i32) {
    %c0_i32 = arith.constant 0 : i32
    %c0_i32_0 = arith.constant 0 : i32
    %c0_i32_1 = arith.constant 0 : i32
    return %c0_i32, %c0_i32_0 : i32, i32
  }
  func.func @transform_4(%arg0: i32) -> (i32, i32) {
    %c0_i32 = arith.constant 0 : i32
    %c0_i32_0 = arith.constant 0 : i32
    %c0_i32_1 = arith.constant 0 : i32
    return %c0_i32, %c0_i32_0 : i32, i32
  }
  func.func @transform_5(%arg0: i32) -> (i32, i32) {
    %c0_i32 = arith.constant 0 : i32
    %c0_i32_0 = arith.constant 0 : i32
    %c0_i32_1 = arith.constant 0 : i32
    return %c0_i32, %c0_i32_0 : i32, i32
  }
  func.func @transform_6(%arg0: i32) -> (i32, i32) {
    %c0_i32 = arith.constant 0 : i32
    %c0_i32_0 = arith.constant 0 : i32
    %c0_i32_1 = arith.constant 0 : i32
    return %c0_i32, %c0_i32_0 : i32, i32
  }
  func.func @transform_7(%arg0: i32) -> (i32, i32) {
    %c0_i32 = arith.constant 0 : i32
    %c0_i32_0 = arith.constant 0 : i32
    %c0_i32_1 = arith.constant 0 : i32
    return %c0_i32, %c0_i32_0 : i32, i32
  }
  func.func @transform_8(%arg0: i32) -> (i32, i32) {
    %c0_i32 = arith.constant 0 : i32
    %c0_i32_0 = arith.constant 0 : i32
    %c0_i32_1 = arith.constant 0 : i32
    return %c0_i32, %c0_i32_0 : i32, i32
  }
  func.func @transform_9(%arg0: i32) -> (i32, i32) {
    %c0_i32 = arith.constant 0 : i32
    %c0_i32_0 = arith.constant 0 : i32
    %c0_i32_1 = arith.constant 0 : i32
    return %c0_i32, %c0_i32_0 : i32, i32
  }
  func.func @transform_10(%arg0: i32) -> (i32, i32) {
    %c0_i32 = arith.constant 0 : i32
    %c0_i32_0 = arith.constant 0 : i32
    return %arg0, %c0_i32 : i32, i32
  }
}

</mosaic_0001>

<bundles_post_ra>
// kernel: tpu_custom_call.1
= control target key start
LH: loop header
LB: loop body
LE: loop exit
PB: predicated region body
PF: predicated region fallthrough
CT: control target
= control target key end

     0   :  { %vm38_vm0 = vcmask 523264   ;;  %s677_s0 = inlined_call_operand.vmem [shape: f32[8,64], index: 0, kind: input, shape index: {}]   ;;  %s678_s1 = inlined_call_operand.vmem [shape: f32[8,128], index: 1, kind: input, shape index: {}]   ;;  %s679_s2 = inlined_call_operand.vmem [shape: bf16[128,64], index: 2, kind: input, shape index: {}]   ;;  %s680_s3 = inlined_call_operand.vmem [shape: f32[1,64], index: 3, kind: input, shape index: {}]   ;;  %s681_s4 = inlined_call_operand.vmem [shape: bf16[128,64], index: 4, kind: input, shape index: {}]   ;;  %s682_s5 = inlined_call_operand.vmem [shape: f32[1,64], index: 5, kind: input, shape index: {}]   ;;  %s683_s6 = inlined_call_operand.vmem [shape: bf16[64,64], index: 6, kind: input, shape index: {}]   ;;  %s684_s7 = inlined_call_operand.vmem [shape: f32[1,64], index: 7, kind: input, shape index: {}]   ;;  %s685_s8 = inlined_call_operand.vmem [shape: bf16[64,64], index: 8, kind: input, shape index: {}]   ;;  %s686_s9 = inlined_call_operand.vmem [shape: f32[1,64], index: 9, kind: input, shape index: {}]   ;;  %s687_s10 = inlined_call_operand.hbm [shape: f32[8,64], index: 10, kind: output, shape index: {}]  }
   0x1   :  { %v577_v0 = vld [vmem:[%s677_s0] sm:$0xff]  ;;  %v464_v1 = vld [vmem:[%s679_s2 + $0x38] sm:$0xff]  ;;  %v463_v4 = vld [vmem:[%s679_s2 + $0x30] sm:$0xff] }
   0x2   :  { %v472_v2 = vld [vmem:[%s681_s4 + $0x38] sm:$0xff]  ;;  %v39_v3 = vsel %vm38_vm0, %v577_v0, 0.0  ;;  %138 = vmatpush.bf16.msra.mxu0 %v464_v1  ;;  %v471_v5 = vld [vmem:[%s681_s4 + $0x30] sm:$0xff] }
   0x3   :  { %40 = vadd.xlane.f32.xlu0 %v39_v3  ;;  %219 = vmatpush.bf16.msra.mxu1 %v472_v2 }
   0x4   :  { %15 = vsyncpa [#allocation3], 0  ;;  %v462_v6 = vld [vmem:[%s679_s2 + $0x28] sm:$0xff]  ;;  %v461_v8 = vld [vmem:[%s679_s2 + $0x20] sm:$0xff]  ;;  %v517_v16 = vmov 64.0   ;;  %s518_s24 = smov [#allocation2]  }
   0x5   :  { %v470_v7 = vld [vmem:[%s681_s4 + $0x28] sm:$0xff]  ;;  %v469_v9 = vld [vmem:[%s681_s4 + $0x20] sm:$0xff]  ;;  %v460_v10 = vld [vmem:[%s679_s2 + $0x18] sm:$0xff]  ;;  %487 = vrcp.f32 %v517_v16  ;;  %s348_s25 = sshll.u32 %s518_s24, 4  ;;  %s349_s25 = int_to_ptr.vmem [resolvable:$true] %s348_s25 }
   0x6   :  { %139 = vmatpush.bf16.msra.mxu0 %v463_v4  ;;  %v468_v11 = vld [vmem:[%s681_s4 + $0x18] sm:$0xff]  ;;  %v459_v12 = vld [vmem:[%s679_s2 + $0x10] sm:$0xff]  ;;  %v458_v14 = vld [vmem:[%s679_s2 + $0x8] sm:$0xff] }
   0x7   :  { %220 = vmatpush.bf16.msra.mxu1 %v471_v5  ;;  %v467_v13 = vld [vmem:[%s681_s4 + $0x10] sm:$0xff]  ;;  %v466_v15 = vld [vmem:[%s681_s4 + $0x8] sm:$0xff]  ;;  %v457_v17 = vld [vmem:[%s679_s2] sm:$0xff] }
   0x8   :  { %v465_v18 = vld [vmem:[%s681_s4] sm:$0xff]  ;;  %v476_v33 = vld [vmem:[%s683_s6 + $0x18] sm:$0xff]  ;;  %v475_v35 = vld [vmem:[%s683_s6 + $0x10] sm:$0xff] }
   0x9   :  { %v68_v19 = vld [vmem:[%s678_s1] sm:$0xff]  ;;  %278 = vmatpush.bf16.msra.mxu2 %v476_v33  ;;  %v474_v37 = vld [vmem:[%s683_s6 + $0x8] sm:$0xff]  ;;  %v480_v40 = vld [vmem:[%s685_s8 + $0x18] sm:$0xff]  ;;  %s350_s1 = sshll.u32 %s687_s10, 4  ;;  %s351_s1 = int_to_ptr.hbm [resolvable:$true] %s350_s1 }
   0xa   :  { %140 = vmatpush.bf16.msra.mxu0 %v462_v6  ;;  %v69_v20 = vpack.c.bf16 %v68_v19, %v68_v19  ;;  %v473_v39 = vld [vmem:[%s683_s6] sm:$0xff]  ;;  %332 = vmatpush.bf16.msra.mxu3 %v480_v40  ;;  %v479_v43 = vld [vmem:[%s685_s8 + $0x10] sm:$0xff]  ;;  %v478_v60 = vld [vmem:[%s685_s8 + $0x8] sm:$0xff] }
   0xb   :  { %221 = vmatpush.bf16.msra.mxu1 %v470_v7  ;;  %v488_v21 = vpop.eup %487  ;;  %v483_v49 = vld [vmem:[%s680_s3] ss:$0 sm:$0xff] }
   0xc   :  { %v43_v22 = vmul.f32 64.0, %v488_v21  ;;  %vm47_vm1 = vweird.f32 %v488_v21  ;;  %v484_v51 = vld [vmem:[%s682_s5] ss:$0 sm:$0xff] }
   0xd   :  { %279 = vmatpush.bf16.msra.mxu2 %v475_v35  ;;  %v477_v61 = vld [vmem:[%s685_s8] sm:$0xff] }
   0xe   :  { %141 = vmatpush.bf16.msra.mxu0 %v461_v8  ;;  %v44_v23 = vsub.f32 1.0, %v43_v22  ;;  %333 = vmatpush.bf16.msra.mxu3 %v479_v43  ;;  %v485_v62 = vld [vmem:[%s684_s7] ss:$0 sm:$0xff] }
   0xf   :  { %222 = vmatpush.bf16.msra.mxu1 %v469_v9  ;;  %v486_v5 = vld [vmem:[%s686_s9] ss:$0 sm:$0xff] }
  0x10   :  { %v45_v24 = vmul.f32 %v488_v21, %v44_v23 }
  0x11   :  { %280 = vmatpush.bf16.msra.mxu2 %v474_v37 }
  0x12   :  { %142 = vmatpush.bf16.msra.mxu0 %v460_v10  ;;  %v46_v25 = vadd.f32 %v488_v21, %v45_v24  ;;  %334 = vmatpush.bf16.msra.mxu3 %v478_v60 }
  0x13   :  { %223 = vmatpush.bf16.msra.mxu1 %v468_v11 }
  0x14   :  { %v48_v26 = vsel %vm47_vm1, %v488_v21, %v46_v25 }
  0x15   :  { %281 = vmatpush.bf16.msra.mxu2 %v473_v39 }
  0x16   :  { %143 = vmatpush.bf16.msra.mxu0 %v459_v12  ;;  %335 = vmatpush.bf16.msra.mxu3 %v477_v61 }
  0x17   :  { %224 = vmatpush.bf16.msra.mxu1 %v467_v13 }
  0x1a   :  { %144 = vmatpush.bf16.msra.mxu0 %v458_v14 }
  0x1b   :  { %225 = vmatpush.bf16.msra.mxu1 %v466_v15 }
  0x1e   :  { %145 = vmatpush.bf16.msra.mxu0 %v457_v17 }
  0x1f   :  { %226 = vmatpush.bf16.msra.mxu1 %v465_v18 }
  0x21   :  { %146 = vmatmul.bf16.vlgmr.msra.gmra.mxu0 %v69_v20 }
  0x22   :  { %227 = vmatmul.bf16.vlgmr.msra.gmra.mxu1 %v69_v20 }
  0x76   :  { %v41_v27 = vpop.xlane.xlu0 %40 }
  0x77   :  { %v49_v28 = vmul.f32 %v48_v26, %v41_v27 }
  0x79   :  { %v50_v29 = vsub.f32 %v577_v0, %v49_v28 }
  0x7b   :  { %v51_v30 = vmul.f32 %v50_v29, %v50_v29 }
  0x7d   :  { %v52_v31 = vsel %vm38_vm0, %v51_v30, 0.0 }
  0x7e   :  { %53 = vadd.xlane.f32.xlu0 %v52_v31 }
  0x9e   :  { %v147_v32 = vpop.f32.mrf.mxu0 }
  0x9f   :  { %v228_v34 = vpop.f32.mrf.mxu1  ;;  %v148_v53 = vadd.f32 %v483_v49, %v147_v32 }
  0xa0   :  { %v229_v56 = vadd.f32 %v484_v51, %v228_v34 }
  0xa6   :  { %v149_v36 = vpop.f32.mrf.mxu0 }
  0xa7   :  { %v230_v38 = vpop.f32.mrf.mxu1 }
  0xf1   :  { %v54_v41 = vpop.xlane.xlu0 %53 }
  0xf2   :  { %v55_v42 = vmul.f32 %v54_v41, %v48_v26 }
  0xf4   :  { %v56_v44 = vadd.f32 1e-05, %v55_v42 }
  0xf6   :  { %489 = vrsqrt.f32 %v56_v44  ;;  %vm63_vm3 = vweird.f32 %v56_v44 }
  0xfc   :  { %v490_v45 = vpop.eup %489 }
  0xfd   :  { %v58_v46 = vmul.f32 %v490_v45, %v56_v44  ;;  %vm64_vm2 = vweird.f32 %v490_v45 }
  0xfe   :  { %vm65_vm4 = vmor %vm63_vm3, %vm64_vm2 }
  0xff   :  { %v59_v47 = vmul.f32 %v490_v45, %v58_v46 }
 0x101   :  { %v60_v48 = vmul.f32 0.5, %v59_v47 }
 0x103   :  { %v61_v50 = vsub.f32 1.5, %v60_v48 }
 0x105   :  { %v62_v52 = vmul.f32 %v490_v45, %v61_v50 }
 0x107   :  { %v66_v54 = vsel %vm65_vm4, %v490_v45, %v62_v52 }
 0x108   :  { %v67_v55 = vmul.f32 %v66_v54, %v50_v29 }
 0x10a   :  { %v232_v57 = vmul.f32 %v148_v53, %v67_v55 }
 0x10c   :  { %v233_v58 = vadd.f32 %v232_v57, %v229_v56 }
 0x10e   :  { %v234_v59 = vpack.c.bf16 %v233_v58, %v233_v58 }
 0x110   :  { %439 = vmatmul.msk.bf16.vlgmr.msra.gmra.mxu2 %vm38_vm0, %v234_v59 }
 0x193   :  { %v283_v63 = vpop.f32.mrf.mxu2 }
 0x194   :  { %v284_v1 = vadd.f32 %v485_v62, %v283_v63 }
 0x196   :  { %v287_v2 = vmax.f32 %v284_v1, 0.0 }
 0x198   :  { %v288_v3 = vpack.c.bf16 %v287_v2, %v287_v2 }
 0x19a   :  { %456 = vmatmul.msk.bf16.vlgmr.msra.gmra.mxu3 %vm38_vm0, %v288_v3 }
 0x19b   :  { %v285_v4 = vpop.f32.mrf.mxu2 }
 0x21d   :  { %v337_v6 = vpop.f32.mrf.mxu3 }
 0x21e   :  { %v338_v7 = vadd.f32 %v486_v5, %v337_v6 }
 0x220   :  { %v341_v8 = vadd.f32 %v338_v7, %v577_v0 }
 0x222   :  { %342 = vst.msk [vmem:[#allocation2] sm:$0xff] %vm38_vm0, %v341_v8 }
 0x223   :  { %353 = dma.vmem_to_hbm [thread:$0]  %s349_s25, 128, %s351_s1, [#allocation3]  }
 0x225   :  { %v339_v9 = vpop.f32.mrf.mxu3 }
 0x226   :  { %515 = dma.done.wait [#allocation3], 128  }
 0x227   :  { %516 = vsyncadd [#allocation3], 4294967168 }
 0x228   :  { %358 = vsyncpa [#allocation3], 1 }

</bundles_post_ra>
